<compile_context>
chip_gen: v6e
topology: v6e:2x2x1
jax: 0.10.0
libtpu: 0.0.40
codegen_flags: <defaults>
</compile_context>

<pallas_src>
import functools

import jax
import jax.numpy as jnp
from jax import lax
from jax.experimental import pallas as pl
from jax.experimental.pallas import tpu as pltpu


def _lora_linear_kernel(x_ref, w_ref, b_ref, a_ref, lb_ref, o_ref,
                        acc_ref, low_ref, *, scaling, k_total, tk, mask_k):
    # x_ref  : (tm, tk)  input rows, K tile
    # w_ref  : (tn, tk)  base weight rows, native (N, K) layout, K tile
    # b_ref  : (1,  tn)  bias tile
    # a_ref  : (R,  tk)  lora_A rows, native (R, K) layout, K tile
    # lb_ref : (tn, R)   lora_B rows, native (N, R) layout
    # o_ref  : (tm, tn)  output tile
    # acc_ref: (tm, tn)  f32 scratch: partial x @ W.T accumulated over K tiles
    # low_ref: (tm, R)   f32 scratch: partial x @ A.T accumulated over K tiles
    k = pl.program_id(2)
    nk = pl.num_programs(2)

    @pl.when(k == 0)
    def _():
        acc_ref[...] = jnp.zeros_like(acc_ref)
        low_ref[...] = jnp.zeros_like(low_ref)

    x = x_ref[...]
    w = w_ref[...]
    a = a_ref[...]

    if mask_k:
        # Zero the K-padding of the ragged last K tile so stale VMEM bytes
        # never enter the accumulation (statically compiled only if needed).
        valid = lax.broadcasted_iota(jnp.int32, (1, tk), 1) < (k_total - k * tk)
        x = jnp.where(valid, x, jnp.zeros((), x.dtype))
        w = jnp.where(valid, w, jnp.zeros((), w.dtype))
        a = jnp.where(valid, a, jnp.zeros((), a.dtype))

    dims = (((1,), (1,)), ((), ()))  # contract last dims: lhs @ rhs.T

    # Base GEMM partial: x @ W.T (K-tile contraction, f32 MXU accumulation).
    acc_ref[...] += lax.dot_general(x, w, dims,
                                    preferred_element_type=jnp.float32)
    # Rank-R down-projection partial: x @ A.T (tiny, R = 8).
    low_ref[...] += lax.dot_general(x, a, dims,
                                    preferred_element_type=jnp.float32)

    @pl.when(k == nk - 1)
    def _():
        # Fold scaling into the tiny (tm, R) intermediate (not the (tm, tn)
        # output), cast once for the MXU, then the up-projection low @ B.T.
        low = (jnp.float32(scaling) * low_ref[...]).astype(lb_ref.dtype)
        adj = lax.dot_general(low, lb_ref[...], dims,
                              preferred_element_type=jnp.float32)
        o_ref[...] = (acc_ref[...] + b_ref[...].astype(jnp.float32) + adj
                      ).astype(o_ref.dtype)


def _round_up(v, m):
    return ((v + m - 1) // m) * m


def lora_linear(x, w, b, lora_a, lora_b, *, lora_alpha=16, r=8,
                block_m=512, block_n=512, block_k=2048):
    """LoRA linear forward.

    x: (M, K); w: (N, K); b: (N,); lora_a: (R, K); lora_b: (N, R).
    Returns (M, N) in x.dtype.  Weights are consumed in their native PyTorch
    layouts — no transposes in the per-call path.  For bandwidth, cast
    weights/activations to bf16 once outside this function.
    """
    M, K = x.shape
    N = w.shape[0]
    R = lora_a.shape[0]
    scaling = lora_alpha / r

    in_bytes = jnp.dtype(x.dtype).itemsize
    out_dtype = x.dtype
    out_bytes = jnp.dtype(out_dtype).itemsize
    # Sublane packing granularity: f32 -> 8, bf16 -> 16, int8/fp8 -> 32.
    sub = {4: 8, 2: 16, 1: 32}.get(in_bytes, 8)

    # Tile selection: full block if the dim is small, otherwise an aligned
    # tile (tm multiple of the sublane pack, tn/tk multiples of 128) so the
    # (8, 128) BlockSpec constraint holds and output stores stay lane-dense.
    tm = M if M <= block_m else _round_up(block_m, sub)
    tn = N if N <= block_n else _round_up(block_n, 128)
    tk = K if K <= block_k else _round_up(block_k, 128)

    def working_set(tm_, tn_, tk_):
        ws = 2 * (tm_ * tk_ + tn_ * tk_ + tn_ + R * tk_ + tn_ * R) * in_bytes
        ws += 2 * tm_ * tn_ * out_bytes           # double-buffered output tile
        ws += (tm_ * tn_ + tm_ * R) * 4           # f32 accumulator scratches
        return ws

    # Conservative budget: leaves headroom inside v7x's 64 MiB physical VMEM
    # (v5e/v6e have 128 MiB, so the same tiles are safe there too).
    vmem_budget = 48 << 20
    while working_set(tm, tn, tk) > vmem_budget:
        if tk > 512:
            tk = max(512, _round_up(tk // 2, 128))
        elif tm > max(128, sub):
            tm = max(max(128, sub), _round_up(tm // 2, sub))
        elif tn > 256:
            tn = max(256, _round_up(tn // 2, 128))
        else:
            break

    grid = (pl.cdiv(M, tm), pl.cdiv(N, tn), pl.cdiv(K, tk))
    gm, gn, gk = grid
    mask_k = (K % tk) != 0

    ws = working_set(tm, tn, tk)
    vmem_limit = int(max(32 << 20, min(ws + (4 << 20), 56 << 20)))

    # Advisory cost estimate so XLA can schedule neighbours around this call.
    flops = 2 * M * N * K + 2 * M * K * R * gn + 2 * M * N * R
    x_stream = M * K * in_bytes * (gn if gk > 1 else 1)  # x re-streamed per N
    w_stream = N * K * in_bytes * gm                     # W re-streamed per M
    bytes_accessed = int(x_stream + w_stream + N * in_bytes + R * K * in_bytes
                         + N * R * in_bytes + M * N * out_bytes)
    cost = pl.CostEstimate(flops=int(flops), transcendentals=0,
                           bytes_accessed=bytes_accessed)

    b2 = b.reshape(1, N)  # metadata-only reshape (no HBM traffic)

    kernel = functools.partial(_lora_linear_kernel, scaling=scaling,
                               k_total=K, tk=tk, mask_k=mask_k)

    return pl.pallas_call(
        kernel,
        out_shape=jax.ShapeDtypeStruct((M, N), out_dtype),
        grid_spec=pltpu.PrefetchScalarGridSpec(
            num_scalar_prefetch=0,
            grid=grid,
            in_specs=[
                pl.BlockSpec((tm, tk), lambda i, j, k: (i, k)),   # x rows
                pl.BlockSpec((tn, tk), lambda i, j, k: (j, k)),   # W rows
                pl.BlockSpec((1, tn), lambda i, j, k: (0, j)),    # bias
                pl.BlockSpec((R, tk), lambda i, j, k: (0, k)),    # lora_A
                pl.BlockSpec((tn, R), lambda i, j, k: (j, 0)),    # lora_B rows
            ],
            out_specs=pl.BlockSpec((tm, tn), lambda i, j, k: (i, j)),
            scratch_shapes=[pltpu.VMEM((tm, tn), jnp.float32),
                            pltpu.VMEM((tm, R), jnp.float32)],
        ),
        compiler_params=pltpu.CompilerParams(
            dimension_semantics=("parallel", "parallel", "arbitrary"),
            vmem_limit_bytes=vmem_limit),
        cost_estimate=cost,
    )(x, w, b2, lora_a, lora_b)


def _reference(x2d, w, b, lora_a, lora_b, scaling):
    return (x2d @ w.T + b) + scaling * ((x2d @ lora_a.T) @ lora_b.T)


if __name__ == "__main__":
    key = jax.random.PRNGKey(0)
    kx, kw, kb, ka, kbb, kx2, kw2, kb2, ka2, kbb2 = jax.random.split(key, 10)

    # ---- Small-shape check (module-consistent shapes), float32 -------------
    batch, seq, in_features, out_features, r, lora_alpha = 2, 8, 32, 32, 8, 16
    scaling = lora_alpha / r

    x = jax.random.normal(kx, (batch, seq, in_features), dtype=jnp.float32)
    w = jax.random.normal(kw, (out_features, in_features), dtype=jnp.float32) * 0.05
    b = jax.random.normal(kb, (out_features,), dtype=jnp.float32) * 0.05
    lora_a = jax.random.normal(ka, (r, in_features), dtype=jnp.float32) * 0.02
    lora_b = jax.random.normal(kbb, (out_features, r), dtype=jnp.float32) * 0.02

    x2d = x.reshape(batch * seq, in_features)
    out2d = lora_linear(x2d, w, b, lora_a, lora_b, lora_alpha=lora_alpha, r=r)
    out = out2d.reshape(batch, seq, out_features)
    jax.block_until_ready(out)

    ref = _reference(x2d, w, b, lora_a, lora_b, scaling)
    ref = ref.reshape(batch, seq, out_features)
    assert jnp.allclose(out, ref, atol=1e-5, rtol=1e-5), "f32 small-shape mismatch"

    # ---- Small-shape check, bf16 inputs (f32 MXU accumulation) -------------
    out_bf = lora_linear(x2d.astype(jnp.bfloat16), w.astype(jnp.bfloat16),
                         b.astype(jnp.bfloat16), lora_a.astype(jnp.bfloat16),
                         lora_b.astype(jnp.bfloat16),
                         lora_alpha=lora_alpha, r=r)
    jax.block_until_ready(out_bf)
    assert jnp.allclose(out_bf.astype(jnp.float32),
                        _reference(x2d, w, b, lora_a, lora_b, scaling),
                        atol=5e-2, rtol=5e-2), "bf16 small-shape mismatch"

    # ---- Multi-tile check incl. K-reduction axis with ragged K tile --------
    M2, K2, N2 = 600, 300, 640   # ragged M, N, and K tiles
    x_m = jax.random.normal(kx2, (M2, K2), dtype=jnp.float32)
    w_m = jax.random.normal(kw2, (N2, K2), dtype=jnp.float32) * 0.05
    b_m = jax.random.normal(kb2, (N2,), dtype=jnp.float32) * 0.05
    a_m = jax.random.normal(ka2, (r, K2), dtype=jnp.float32) * 0.02
    bb_m = jax.random.normal(kbb2, (N2, r), dtype=jnp.float32) * 0.02
    ref_m = _reference(x_m, w_m, b_m, a_m, bb_m, scaling)

    # (a) small explicit blocks -> grid (3, 2, 3), masked last-K tile.
    out_m = lora_linear(x_m, w_m, b_m, a_m, bb_m, lora_alpha=lora_alpha, r=r,
                        block_m=256, block_n=512, block_k=128)
    jax.block_until_ready(out_m)
    assert jnp.allclose(out_m, ref_m, atol=2e-3, rtol=2e-3), "K-tiled mismatch"

    # (b) default blocks -> grid (2, 2, 1), full-K resident path.
    out_d = lora_linear(x_m, w_m, b_m, a_m, bb_m, lora_alpha=lora_alpha, r=r)
    jax.block_until_ready(out_d)
    assert jnp.allclose(out_d, ref_m, atol=2e-3, rtol=2e-3), "default-tile mismatch"

    # (c) bf16 multi-tile with K-blocking (bf16 sublane packing + masking).
    x_bf, w_bf = x_m.astype(jnp.bfloat16), w_m.astype(jnp.bfloat16)
    b_bf, a_bf, bb_bf = (b_m.astype(jnp.bfloat16), a_m.astype(jnp.bfloat16),
                         bb_m.astype(jnp.bfloat16))
    out_mbf = lora_linear(x_bf, w_bf, b_bf, a_bf, bb_bf,
                          lora_alpha=lora_alpha, r=r,
                          block_m=256, block_n=512, block_k=128)
    jax.block_until_ready(out_mbf)
    ref_mbf = _reference(x_bf.astype(jnp.float32), w_bf.astype(jnp.float32),
                         b_bf.astype(jnp.float32), a_bf.astype(jnp.float32),
                         bb_bf.astype(jnp.float32), scaling)
    assert jnp.allclose(out_mbf.astype(jnp.float32), ref_mbf,
                        atol=3e-2, rtol=3e-2), "bf16 K-tiled mismatch"

    print("KERNEL_OK")
</pallas_src>

<mosaic_0001>
module attributes {stable_mosaic.version = 11 : i64} {
  func.func @_lora_linear_kernel(%arg0: i32, %arg1: i32, %arg2: i32, %arg3: memref<16x32xf32, #tpu.memory_space<vmem>>, %arg4: memref<32x32xf32, #tpu.memory_space<vmem>>, %arg5: memref<1x32xf32, #tpu.memory_space<vmem>>, %arg6: memref<8x32xf32, #tpu.memory_space<vmem>>, %arg7: memref<32x8xf32, #tpu.memory_space<vmem>>, %arg8: memref<16x32xf32, #tpu.memory_space<vmem>>, %arg9: memref<16x32xf32, #tpu.memory_space<vmem>>, %arg10: memref<16x8xf32, #tpu.memory_space<vmem>>) attributes {dimension_semantics = [#tpu.dimension_semantics<parallel>, #tpu.dimension_semantics<parallel>, #tpu.dimension_semantics<arbitrary>], iteration_bounds = array<i64: 1, 1, 1>, scalar_prefetch = 0 : i64, scratch_operands = 2 : i64, tpu.core_type = #tpu.core_type<tc>, window_params = [{transform_indices = @transform_0, window_bounds = array<i64: 16, 32>}, {transform_indices = @transform_1, window_bounds = array<i64: 32, 32>}, {transform_indices = @transform_2, window_bounds = array<i64: 1, 32>}, {transform_indices = @transform_3, window_bounds = array<i64: 8, 32>}, {transform_indices = @transform_4, window_bounds = array<i64: 32, 8>}, {transform_indices = @transform_5, window_bounds = array<i64: 16, 32>}]} {
    %c0_i32 = arith.constant 0 : i32
    %0 = arith.cmpi eq, %arg2, %c0_i32 : i32
    %1 = arith.extui %0 : i1 to i32
    %c0_i32_0 = arith.constant 0 : i32
    %2 = arith.cmpi ne, %1, %c0_i32_0 : i32
    scf.if %2 {
      %cst_17 = arith.constant 0.000000e+00 : f32
      %17 = vector.broadcast %cst_17 : f32 to vector<16x32xf32>
      %c0_18 = arith.constant 0 : index
      %c0_19 = arith.constant 0 : index
      %18 = vector.load %arg9[%c0_18, %c0_19] : memref<16x32xf32, #tpu.memory_space<vmem>>, vector<16x32xf32>
      tpu.vector_store %arg9[%c0_18, %c0_19], %17 {strides = array<i32>} : memref<16x32xf32, #tpu.memory_space<vmem>>, vector<16x32xf32>,
      %cst_20 = arith.constant 0.000000e+00 : f32
      %19 = vector.broadcast %cst_20 : f32 to vector<16x8xf32>
      %c0_21 = arith.constant 0 : index
      %c0_22 = arith.constant 0 : index
      %20 = vector.load %arg10[%c0_21, %c0_22] : memref<16x8xf32, #tpu.memory_space<vmem>>, vector<16x8xf32>
      tpu.vector_store %arg10[%c0_21, %c0_22], %19 {strides = array<i32>} : memref<16x8xf32, #tpu.memory_space<vmem>>, vector<16x8xf32>,
    } else {
    }
    %c0 = arith.constant 0 : index
    %c0_1 = arith.constant 0 : index
    %3 = vector.load %arg3[%c0, %c0_1] : memref<16x32xf32, #tpu.memory_space<vmem>>, vector<16x32xf32>
    %c0_2 = arith.constant 0 : index
    %c0_3 = arith.constant 0 : index
    %4 = vector.load %arg4[%c0_2, %c0_3] : memref<32x32xf32, #tpu.memory_space<vmem>>, vector<32x32xf32>
    %c0_4 = arith.constant 0 : index
    %c0_5 = arith.constant 0 : index
    %5 = vector.load %arg6[%c0_4, %c0_5] : memref<8x32xf32, #tpu.memory_space<vmem>>, vector<8x32xf32>
    %c0_6 = arith.constant 0 : index
    %c0_7 = arith.constant 0 : index
    %6 = vector.load %arg9[%c0_6, %c0_7] : memref<16x32xf32, #tpu.memory_space<vmem>>, vector<16x32xf32>
    %cst = arith.constant dense<0.000000e+00> : vector<16x32xf32>
    %7 = tpu.matmul %3, %4, %cst {dimension_numbers = #tpu.dot_dimension_numbers<[1], [1], [0], [0], [0, 0, 1, 0], [], []>} : vector<16x32xf32>, vector<32x32xf32>, vector<16x32xf32> -> vector<16x32xf32>
    %8 = arith.addf %6, %7 : vector<16x32xf32>
    %c0_8 = arith.constant 0 : index
    %c0_9 = arith.constant 0 : index
    %9 = vector.load %arg9[%c0_8, %c0_9] : memref<16x32xf32, #tpu.memory_space<vmem>>, vector<16x32xf32>
    tpu.vector_store %arg9[%c0_8, %c0_9], %8 {strides = array<i32>} : memref<16x32xf32, #tpu.memory_space<vmem>>, vector<16x32xf32>,
    %c0_10 = arith.constant 0 : index
    %c0_11 = arith.constant 0 : index
    %10 = vector.load %arg10[%c0_10, %c0_11] : memref<16x8xf32, #tpu.memory_space<vmem>>, vector<16x8xf32>
    %cst_12 = arith.constant dense<0.000000e+00> : vector<16x8xf32>
    %11 = tpu.matmul %3, %5, %cst_12 {dimension_numbers = #tpu.dot_dimension_numbers<[1], [1], [0], [0], [0, 0, 1, 0], [], []>} : vector<16x32xf32>, vector<8x32xf32>, vector<16x8xf32> -> vector<16x8xf32>
    %12 = arith.addf %10, %11 : vector<16x8xf32>
    %c0_13 = arith.constant 0 : index
    %c0_14 = arith.constant 0 : index
    %13 = vector.load %arg10[%c0_13, %c0_14] : memref<16x8xf32, #tpu.memory_space<vmem>>, vector<16x8xf32>
    tpu.vector_store %arg10[%c0_13, %c0_14], %12 {strides = array<i32>} : memref<16x8xf32, #tpu.memory_space<vmem>>, vector<16x8xf32>,
    %c0_i32_15 = arith.constant 0 : i32
    %14 = arith.cmpi eq, %arg2, %c0_i32_15 : i32
    %15 = arith.extui %14 : i1 to i32
    %c0_i32_16 = arith.constant 0 : i32
    %16 = arith.cmpi ne, %15, %c0_i32_16 : i32
    scf.if %16 {
      %c0_17 = arith.constant 0 : index
      %c0_18 = arith.constant 0 : index
      %17 = vector.load %arg10[%c0_17, %c0_18] : memref<16x8xf32, #tpu.memory_space<vmem>>, vector<16x8xf32>
      %cst_19 = arith.constant 2.000000e+00 : f32
      %18 = vector.broadcast %cst_19 : f32 to vector<16x8xf32>
      %19 = arith.mulf %18, %17 : vector<16x8xf32>
      %c0_20 = arith.constant 0 : index
      %c0_21 = arith.constant 0 : index
      %20 = vector.load %arg7[%c0_20, %c0_21] : memref<32x8xf32, #tpu.memory_space<vmem>>, vector<32x8xf32>
      %cst_22 = arith.constant dense<0.000000e+00> : vector<16x32xf32>
      %21 = tpu.matmul %19, %20, %cst_22 {dimension_numbers = #tpu.dot_dimension_numbers<[1], [1], [0], [0], [0, 0, 1, 0], [], []>} : vector<16x8xf32>, vector<32x8xf32>, vector<16x32xf32> -> vector<16x32xf32>
      %c0_23 = arith.constant 0 : index
      %c0_24 = arith.constant 0 : index
      %22 = vector.load %arg9[%c0_23, %c0_24] : memref<16x32xf32, #tpu.memory_space<vmem>>, vector<16x32xf32>
      %c0_25 = arith.constant 0 : index
      %c0_26 = arith.constant 0 : index
      %23 = vector.load %arg5[%c0_25, %c0_26] : memref<1x32xf32, #tpu.memory_space<vmem>>, vector<1x32xf32>
      %24 = vector.broadcast %23 : vector<1x32xf32> to vector<16x32xf32>
      %25 = arith.addf %22, %24 : vector<16x32xf32>
      %26 = arith.addf %25, %21 : vector<16x32xf32>
      %c0_27 = arith.constant 0 : index
      %c0_28 = arith.constant 0 : index
      %27 = vector.load %arg8[%c0_27, %c0_28] : memref<16x32xf32, #tpu.memory_space<vmem>>, vector<16x32xf32>
      tpu.vector_store %arg8[%c0_27, %c0_28], %26 {strides = array<i32>} : memref<16x32xf32, #tpu.memory_space<vmem>>, vector<16x32xf32>,
    } else {
    }
    return
  }
  func.func @transform_0(%arg0: i32, %arg1: i32, %arg2: i32) -> (i32, i32) {
    %c0_i32 = arith.constant 0 : i32
    return %arg0, %arg2 : i32, i32
  }
  func.func @transform_1(%arg0: i32, %arg1: i32, %arg2: i32) -> (i32, i32) {
    %c0_i32 = arith.constant 0 : i32
    return %arg1, %arg2 : i32, i32
  }
  func.func @transform_2(%arg0: i32, %arg1: i32, %arg2: i32) -> (i32, i32) {
    %c0_i32 = arith.constant 0 : i32
    %c0_i32_0 = arith.constant 0 : i32
    return %c0_i32, %arg1 : i32, i32
  }
  func.func @transform_3(%arg0: i32, %arg1: i32, %arg2: i32) -> (i32, i32) {
    %c0_i32 = arith.constant 0 : i32
    %c0_i32_0 = arith.constant 0 : i32
    return %c0_i32, %arg2 : i32, i32
  }
  func.func @transform_4(%arg0: i32, %arg1: i32, %arg2: i32) -> (i32, i32) {
    %c0_i32 = arith.constant 0 : i32
    %c0_i32_0 = arith.constant 0 : i32
    return %arg1, %c0_i32 : i32, i32
  }
  func.func @transform_5(%arg0: i32, %arg1: i32, %arg2: i32) -> (i32, i32) {
    %c0_i32 = arith.constant 0 : i32
    return %arg0, %arg1 : i32, i32
  }
}

</mosaic_0001>

<bundles_post_ra>
// kernel: tpu_custom_call.1
= control target key start
LH: loop header
LB: loop body
LE: loop exit
PB: predicated region body
PF: predicated region fallthrough
CT: control target
= control target key end

     0   :  { %10 = vsyncpa [#allocation5], 0  ;;  %s591_s0 = inlined_call_operand.hbm [shape: f32[16,32], index: 0, kind: input, shape index: {}]   ;;  %s592_s1 = inlined_call_operand.vmem [shape: f32[32,32], index: 1, kind: input, shape index: {}]   ;;  %s593_s2 = inlined_call_operand.vmem [shape: f32[1,32], index: 2, kind: input, shape index: {}]   ;;  %s594_s3 = inlined_call_operand.vmem [shape: f32[8,32], index: 3, kind: input, shape index: {}]   ;;  %s595_s4 = inlined_call_operand.vmem [shape: f32[32,8], index: 4, kind: input, shape index: {}]   ;;  %s596_s5 = inlined_call_operand.hbm [shape: f32[16,32], index: 5, kind: output, shape index: {}]  }
   0x1   :  { %11 = vsyncpa [#allocation6], 0  ;;  %s480_s18 = smov [#allocation4]  }
   0x2   :  { %s17_s19 = sshll.u32 %s480_s18, 4  ;;  %s18_s19 = int_to_ptr.vmem [resolvable:$true] %s17_s19 }
   0x3   :  { %s444_s20 = scalar_lea.vmem %s18_s19, 256  ;;  %p449_p1 = scmp.lt.s32.totalorder %s18_s19, %s18_s19 }
   0x4   :  { %p445_p0 = scmp.ne.s32.totalorder %s18_s19, %s444_s20  ;;  %p450_p2 = scmp.lt.s32.totalorder %s444_s20, %s444_s20 }
   0x6   :  { %p451_p3 = por %p450_p2, %p449_p1 }
   0x8   :  { %p452_p4 = pnand %p451_p3, %p445_p0 }
   0xa   :  { %455 = shalt.err (!%p452_p4)
}
   0xb   :  { %s481_s21 = smov 128   ;;  %s482_s22 = smov 8  }
   0xc   :  { %23 = dma.hbm_to_vmem [thread:$0]  %s591_s0, 256, %s18_s19, [#allocation5], %s481_s21, %s481_s21, %s482_s22  }
   0xd   :  { %476 = dma.done.wait [#allocation5], 256  }
   0xe   :  { %477 = vsyncadd [#allocation5], 4294967040  ;;  %vm39_vm0 = vcmask 261120   ;;  %vm42_vm1 = vcmask 64512   ;;  %v483_v0 = vmov 0.0   ;;  %v51_v1 = vld [vmem:[%s594_s3] sm:$0xff] }
   0xf   :  { %44 = vst.msk [vmem:[#allocation3 + $0x8] sm:$0xff] %vm42_vm1, %v483_v0  ;;  %43 = vst.msk [vmem:[#allocation3] sm:$0xff] %vm42_vm1, %v483_v0  ;;  %v45_v2 = vld [vmem:[#allocation4] sm:$0xff]  ;;  %415 = vmatprep.subr.msk.mxu1 %vm39_vm0, %v51_v1  ;;  %v50_v3 = vld [vmem:[%s592_s1 + $0x18] sm:$0xff]  ;;  %s484_s16 = smov [#allocation7]  }
  0x10   :  { %40 = vst.msk [vmem:[#allocation2] sm:$0xff] %vm39_vm0, %v483_v0  ;;  %41 = vst.msk [vmem:[#allocation2 + $0x8] sm:$0xff] %vm39_vm0, %v483_v0  ;;  %417 = vmatprep.mubr.msk.f32.mxu1 %vm39_vm0, %v45_v2  ;;  %v49_v4 = vld [vmem:[%s592_s1 + $0x10] sm:$0xff]  ;;  %416 = vmatpush3.xpose.msk.msra.mxu1 %vm39_vm0, %v51_v1  ;;  %v46_v5 = vld [vmem:[#allocation4 + $0x8] sm:$0xff]  ;;  %s361_s17 = sshll.u32 %s484_s16, 4  ;;  %s362_s17 = int_to_ptr.vmem [resolvable:$true] %s361_s17 }
  0x11   :  { %404 = vmatprep.subr.msk.mxu0 %vm39_vm0, %v50_v3  ;;  %412 = vmatprep.mubr.msk.f32.mxu0 %vm39_vm0, %v45_v2  ;;  %v48_v6 = vld [vmem:[%s592_s1 + $0x8] sm:$0xff]  ;;  %v47_v7 = vld [vmem:[%s592_s1] sm:$0xff]  ;;  %v247_v8 = vld [vmem:[%s595_s4 + $0x18] sm:$0xff]  ;;  %s456_s18 = scalar_lea.vmem %s362_s17, 256  ;;  %p461_p6 = scmp.lt.s32.totalorder %s362_s17, %s362_s17 }
  0x12   :  { %405 = vmatpush3.xpose.msk.msra.mxu0 %vm39_vm0, %v50_v3  ;;  %420 = vmatprep.subr.msk.mxu1 %vm42_vm1, %v247_v8  ;;  %v246_v9 = vld [vmem:[%s595_s4 + $0x10] sm:$0xff]  ;;  %v245_v10 = vld [vmem:[%s595_s4 + $0x8] sm:$0xff]  ;;  %v244_v11 = vld [vmem:[%s595_s4] sm:$0xff]  ;;  %p457_p5 = scmp.ne.s32.totalorder %s362_s17, %s456_s18  ;;  %p462_p7 = scmp.lt.s32.totalorder %s456_s18, %s456_s18 }
  0x13   :  { %406 = vmatprep.subr.msk.mxu0 %vm39_vm0, %v49_v4  ;;  %418 = vmatmul.mubr.msk.f32.vlgmr.msra.gmra.mxu1 %vm39_vm0, %v46_v5  ;;  %v388_v29 = vld [vmem:[%s593_s2] ss:$0 sm:$0xff] }
  0x14   :  { %421 = vmatpush3.xpose.msk.msra.mxu1 %vm42_vm1, %v247_v8  ;;  %p463_p8 = por %p462_p7, %p461_p6 }
  0x15   :  { %422 = vmatprep.subr.msk.mxu1 %vm42_vm1, %v246_v9 }
  0x16   :  { %407 = vmatpush3.xpose.msk.msra.mxu0 %vm39_vm0, %v49_v4  ;;  %v153_v12 = vld [vmem:[#allocation3 + $0x8] sm:$0xff]  ;;  %v152_v14 = vld [vmem:[#allocation3] sm:$0xff]  ;;  %p464_p9 = pnand %p463_p8, %p457_p5 }
  0x17   :  { %408 = vmatprep.subr.msk.mxu0 %vm39_vm0, %v48_v6  ;;  %v53_v19 = vld [vmem:[#allocation2 + $0x8] sm:$0xff]  ;;  %v52_v23 = vld [vmem:[#allocation2] sm:$0xff] }
  0x18   :  { %423 = vmatpush3.xpose.msk.msra.mxu1 %vm42_vm1, %v246_v9 }
  0x19   :  { %424 = vmatprep.subr.msk.mxu1 %vm42_vm1, %v245_v10 }
  0x1a   :  { %409 = vmatpush3.xpose.msk.msra.mxu0 %vm39_vm0, %v48_v6 }
  0x1b   :  { %410 = vmatprep.subr.msk.mxu0 %vm39_vm0, %v47_v7 }
  0x1c   :  { %425 = vmatpush3.xpose.msk.msra.mxu1 %vm42_vm1, %v245_v10 }
  0x1d   :  { %426 = vmatprep.subr.msk.mxu1 %vm42_vm1, %v244_v11 }
  0x1e   :  { %411 = vmatpush3.xpose.msk.msra.mxu0 %vm39_vm0, %v47_v7 }
  0x20   :  { %427 = vmatpush3.xpose.msk.msra.mxu1 %vm42_vm1, %v244_v11 }
  0x21   :  { %413 = vmatmul.mubr.msk.f32.vlgmr.msra.gmra.mxu0 %vm39_vm0, %v46_v5 }
  0xd3   :  { %v419_v13 = vpop.f32.mrf.mxu1 }
  0xd4   :  { %v233_v15 = vadd.f32 %v419_v13, %v153_v12 }
  0xd5   :  { %v223_v16 = vpop.f32.mrf.mxu1 }
  0xd6   :  { %236 = vst.msk [vmem:[#allocation3 + $0x8] sm:$0xff] %vm42_vm1, %v233_v15  ;;  %v232_v17 = vadd.f32 %v223_v16, %v152_v14 }
  0xd8   :  { %235 = vst.msk [vmem:[#allocation3] sm:$0xff] %vm42_vm1, %v232_v17 }
  0xdd   :  { %v241_v18 = vld [vmem:[#allocation3 + $0x8] sm:$0xff] }
  0xde   :  { %v243_v24 = vmul.f32 2.0, %v241_v18 }
  0xdf   :  { %v240_v20 = vld [vmem:[#allocation3] sm:$0xff] }
  0xe0   :  { %v242_v21 = vmul.f32 2.0, %v240_v20 }
  0xe1   :  { %v414_v22 = vpop.f32.mrf.mxu0 }
  0xe2   :  { %v149_v25 = vadd.f32 %v414_v22, %v53_v19  ;;  %428 = vmatprep.mubr.msk.f32.mxu1 %vm42_vm1, %v242_v21 }
  0xe3   :  { %v139_v26 = vpop.f32.mrf.mxu0  ;;  %429 = vmatmul.mubr.msk.f32.vlgmr.msra.gmra.mxu1 %vm42_vm1, %v243_v24 }
  0xe4   :  { %151 = vst.msk [vmem:[#allocation2 + $0x8] sm:$0xff] %vm39_vm0, %v149_v25  ;;  %v148_v27 = vadd.f32 %v139_v26, %v52_v23 }
  0xe6   :  { %150 = vst.msk [vmem:[#allocation2] sm:$0xff] %vm39_vm0, %v148_v27 }
  0xeb   :  { %v342_v28 = vld [vmem:[#allocation2 + $0x8] sm:$0xff] }
  0xec   :  { %v351_v30 = vadd.f32 %v388_v29, %v342_v28 }
  0xed   :  { %v341_v31 = vld [vmem:[#allocation2] sm:$0xff] }
  0xee   :  { %v350_v34 = vadd.f32 %v388_v29, %v341_v31 }
 0x1a3   :  { %v430_v32 = vpop.f32.mrf.mxu1 }
 0x1a4   :  { %v353_v33 = vadd.f32 %v430_v32, %v351_v30 }
 0x1a5   :  { %v332_v35 = vpop.f32.mrf.mxu1 }
 0x1a6   :  { %355 = vst.msk [vmem:[#allocation7 + $0x8] sm:$0xff] %vm39_vm0, %v353_v33  ;;  %v352_v36 = vadd.f32 %v350_v34, %v332_v35 }
 0x1a8   :  { %354 = vst.msk [vmem:[#allocation7] sm:$0xff] %vm39_vm0, %v352_v36 }
 0x1a9   :  { %467 = shalt.err (!%p464_p9)
}
 0x1aa   :  { %367 = dma.vmem_to_hbm [thread:$0]  %s362_s17, 256, %s596_s5, [#allocation6], %s481_s21, %s481_s21, %s482_s22  }
 0x1ab   :  { %478 = dma.done.wait [#allocation6], 256  }
 0x1ac   :  { %479 = vsyncadd [#allocation6], 4294967040 }
 0x1ad   :  { %371 = vsyncpa [#allocation5], 1 }
 0x1ae   :  { %372 = vsyncpa [#allocation6], 1 }

</bundles_post_ra>
